<compile_context>
chip_gen: v5e
topology: v5e:2x2
jax: 0.10.0
libtpu: 0.0.40
codegen_flags: <defaults>
</compile_context>

<pallas_src>
import functools

import jax
import jax.numpy as jnp
from jax.experimental import pallas as pl
from jax.experimental.pallas import tpu as pltpu

EPS = 1e-5            # BatchNorm2d default eps
LANES = 128
_VMEM_LIMIT = 48 * 1024 * 1024   # explicit scoped-VMEM limit, safe on v5e/v6e/v7x


def _round_up(x, m):
    return ((x + m - 1) // m) * m


def _conv_stats_kernel(p_ref, w_ref, y_ref, stats_ref):
    """One (parity, row-tile) step: deconv-as-matmul + partial BN statistics.

    p_ref    : (tile_m, 4*Cin)   bf16 2x2-conv patches for this parity
    w_ref    : (4*Cin, Cout_p)   bf16 parity sub-kernel
    y_ref    : (tile_m, Cout_p)  f32  conv output tile
    stats_ref: (2, Cout_p)       f32  per-tile [sum ; sum-of-squares]
    """
    y = jnp.dot(p_ref[...], w_ref[...], preferred_element_type=jnp.float32)
    y_ref[...] = y
    # Two slice stores (no concatenate); partial stats per grid step.
    # TODO(synk): switch to per-tile mean/M2 (Chan) combination if M grows
    # into the millions (E[x^2]-E[x]^2 cancellation).
    stats_ref[0:1, :] = jnp.sum(y, axis=0, keepdims=True)
    stats_ref[1:2, :] = jnp.sum(y * y, axis=0, keepdims=True)


def _bn_affine_kernel(y_ref, ss_ref, o_ref):
    """In-place BatchNorm application: out = y * scale + shift (single FMA)."""
    o_ref[...] = y_ref[...] * ss_ref[0:1, :] + ss_ref[1:2, :]


@functools.partial(jax.jit,
                   static_argnames=("kernel", "stride", "padding", "tile_m"))
def upsample_conv_forward(x_nchw, w_ct, bias, gamma, beta,
                          *, kernel=4, stride=2, padding=1, tile_m=1024):
    """Forward pass of UpSampleConv. x_nchw: (N, Cin, H, W) -> (N, Cout, 2H, 2W)."""
    del bias  # cancels exactly under training-mode BatchNorm
    assert kernel == 4 and stride == 2 and padding == 1, (
        "parity decomposition is specialized to kernel=4, stride=2, padding=1")

    N, Cin, H, W = x_nchw.shape
    Cout = w_ct.shape[1]
    OH, OW = 2 * H, 2 * W

    Kdim = 4 * Cin                        # 2x2 taps x Cin
    Cout_p = _round_up(Cout, LANES)       # lane-dense output stores

    x = jnp.transpose(x_nchw, (0, 2, 3, 1)).astype(jnp.float32)   # NHWC
    x_pad = jnp.pad(x, ((0, 0), (1, 1), (1, 1), (0, 0)))

    # --- 4-way parity decomposition of the stride-2 deconv -------------------
    # out[n, 2m+ph, 2k+pw, co] =
    #   sum_{dh,dw in {0,1}} x_pad[n, m+ph+dh, k+pw+dw, :]
    #                        @ w_ct[:, co, 3-ph-2*dh, 3-pw-2*dw]
    M = N * H * W
    patch_par, w_par = [], []
    for ph in range(2):
        for pw in range(2):
            taps_x, taps_w = [], []
            for dh in range(2):
                for dw in range(2):
                    taps_x.append(
                        x_pad[:, ph + dh:ph + dh + H, pw + dw:pw + dw + W, :])
                    taps_w.append(w_ct[:, :, 3 - ph - 2 * dh, 3 - pw - 2 * dw])
            patch_par.append(jnp.stack(taps_x, axis=3).reshape(M, Kdim))
            w_par.append(jnp.stack(taps_w, axis=0).reshape(Kdim, Cout))
    patches = jnp.stack(patch_par, axis=0).astype(jnp.bfloat16)   # (4, M, Kdim)
    w_all = jnp.stack(w_par, axis=0).astype(jnp.bfloat16)         # (4, Kdim, Cout)
    w_all = jnp.pad(w_all, ((0, 0), (0, 0), (0, Cout_p - Cout)))  # lane-dense

    # Row tiling: ceil-div grid + zero-padded rows (zeros contribute nothing
    # to the BN sums, and their outputs are sliced away afterwards).
    tile_m = min(tile_m, _round_up(M, 256))
    n_tiles = -(-M // tile_m)
    M_pad = n_tiles * tile_m
    patches = jnp.pad(patches, ((0, 0), (0, M_pad - M), (0, 0)))

    # ---- Pass 1: 4 parity matmuls + per-tile partial BN stats ---------------
    y, stats = pl.pallas_call(
        _conv_stats_kernel,
        out_shape=(jax.ShapeDtypeStruct((4, M_pad, Cout_p), jnp.float32),
                   jax.ShapeDtypeStruct((4 * n_tiles, 2, Cout_p), jnp.float32)),
        grid=(4, n_tiles),
        in_specs=[pl.BlockSpec((None, tile_m, Kdim), lambda p, i: (p, i, 0)),
                  pl.BlockSpec((None, Kdim, Cout_p), lambda p, i: (p, 0, 0))],
        out_specs=(pl.BlockSpec((None, tile_m, Cout_p), lambda p, i: (p, i, 0)),
                   pl.BlockSpec((None, 2, Cout_p),
                                lambda p, i: (p * n_tiles + i, 0, 0))),
        compiler_params=pltpu.CompilerParams(
            dimension_semantics=("parallel", "parallel"),
            vmem_limit_bytes=_VMEM_LIMIT),
    )(patches, w_all)

    # ---- Tiny glue: fold stats into per-channel scale/shift ------------------
    m_total = jnp.float32(4 * M)                 # = N * OH * OW real rows
    tot = jnp.sum(stats, axis=0)                 # (2, Cout_p)
    mean = tot[0] / m_total
    var = jnp.maximum(tot[1] / m_total - mean * mean, 0.0)   # biased variance
    gamma_p = jnp.pad(gamma.astype(jnp.float32), (0, Cout_p - Cout))
    beta_p = jnp.pad(beta.astype(jnp.float32), (0, Cout_p - Cout))
    scale = gamma_p * jax.lax.rsqrt(var + EPS)
    shift = beta_p - mean * scale
    ss = jnp.stack([scale, shift], axis=0)       # (2, Cout_p)

    # ---- Pass 2: in-place normalization (single FMA per element) ------------
    y_norm = pl.pallas_call(
        _bn_affine_kernel,
        out_shape=jax.ShapeDtypeStruct((4, M_pad, Cout_p), jnp.float32),
        grid=(4, n_tiles),
        in_specs=[pl.BlockSpec((None, tile_m, Cout_p), lambda p, i: (p, i, 0)),
                  pl.BlockSpec((2, Cout_p), lambda p, i: (0, 0))],
        out_specs=pl.BlockSpec((None, tile_m, Cout_p), lambda p, i: (p, i, 0)),
        input_output_aliases={0: 0},
        compiler_params=pltpu.CompilerParams(
            dimension_semantics=("parallel", "parallel"),
            vmem_limit_bytes=_VMEM_LIMIT),
    )(y, ss)

    # ---- Reassemble the 4 parity planes into (N, Cout, 2H, 2W) --------------
    out = y_norm[:, :M, :Cout].reshape(2, 2, N, H, W, Cout)     # (ph,pw,n,h,w,c)
    out = jnp.transpose(out, (2, 3, 0, 4, 1, 5)).reshape(N, OH, OW, Cout)
    return jnp.transpose(out, (0, 3, 1, 2))                     # NCHW


def _reference(x_nchw, w_ct, bias, gamma, beta, *, matmul_dtype=jnp.float32,
               kernel=4, stride=2, padding=1):
    """Pure-JAX reference (ConvTranspose2d + training-mode BatchNorm2d)."""
    K = kernel
    x = jnp.transpose(x_nchw, (0, 2, 3, 1)).astype(matmul_dtype)
    w_hwio = jnp.transpose(w_ct[:, :, ::-1, ::-1], (2, 3, 0, 1)).astype(matmul_dtype)
    pad = K - 1 - padding
    y = jax.lax.conv_general_dilated(
        x, w_hwio, window_strides=(1, 1),
        padding=[(pad, pad), (pad, pad)],
        lhs_dilation=(stride, stride),
        dimension_numbers=("NHWC", "HWIO", "NHWC"),
        preferred_element_type=jnp.float32)
    y = y + bias.reshape(1, 1, 1, -1).astype(jnp.float32)
    mean = jnp.mean(y, axis=(0, 1, 2), keepdims=True)
    var = jnp.mean((y - mean) ** 2, axis=(0, 1, 2), keepdims=True)
    y = (y - mean) * jax.lax.rsqrt(var + EPS) * gamma.reshape(1, 1, 1, -1) \
        + beta.reshape(1, 1, 1, -1)
    return jnp.transpose(y, (0, 3, 1, 2))


if __name__ == "__main__":
    N, Cin, H, W = 2, 4, 16, 16
    Cout, K = 8, 4

    key = jax.random.PRNGKey(0)
    kx, kw, kb = jax.random.split(key, 3)
    x = jax.random.normal(kx, (N, Cin, H, W), jnp.float32)
    # ConvTranspose2d weight shape: (in_channels, out_channels, kH, kW)
    w = jax.random.normal(kw, (Cin, Cout, K, K), jnp.float32) * 0.1
    b = jax.random.normal(kb, (Cout,), jnp.float32) * 0.1
    gamma = jnp.ones((Cout,), jnp.float32)   # BatchNorm2d weight init
    beta = jnp.zeros((Cout,), jnp.float32)   # BatchNorm2d bias init

    out = jax.block_until_ready(upsample_conv_forward(x, w, b, gamma, beta))
    assert out.shape == (N, Cout, 2 * H, 2 * W)

    # Reference with the same bf16 matmul-operand precision (f32 accumulation).
    ref_bf16 = _reference(x, w, b, gamma, beta, matmul_dtype=jnp.bfloat16)
    err_bf16 = float(jnp.max(jnp.abs(out - ref_bf16)))
    assert err_bf16 < 2e-3, f"mismatch vs bf16-precision reference: {err_bf16}"

    # Sanity vs full-f32 reference (difference is bf16 operand rounding only).
    ref_f32 = _reference(x, w, b, gamma, beta, matmul_dtype=jnp.float32)
    err_f32 = float(jnp.max(jnp.abs(out - ref_f32)))
    assert err_f32 < 5e-2, f"mismatch vs f32 reference: {err_f32}"

    print("KERNEL_OK")
</pallas_src>

<mosaic_0001>
module attributes {stable_mosaic.version = 11 : i64} {
  func.func @_conv_stats_kernel(%arg0: i32, %arg1: i32, %arg2: memref<1x512x16xbf16, #tpu.memory_space<vmem>>, %arg3: memref<1x16x128xbf16, #tpu.memory_space<vmem>>, %arg4: memref<1x512x128xf32, #tpu.memory_space<vmem>>, %arg5: memref<1x2x128xf32, #tpu.memory_space<vmem>>) attributes {dimension_semantics = [#tpu.dimension_semantics<parallel>, #tpu.dimension_semantics<parallel>], iteration_bounds = array<i64: 4, 1>, scalar_prefetch = 0 : i64, scratch_operands = 0 : i64, tpu.core_type = #tpu.core_type<tc>, window_params = [{transform_indices = @transform_0, window_bounds = array<i64: 1, 512, 16>}, {transform_indices = @transform_1, window_bounds = array<i64: 1, 16, 128>}, {transform_indices = @transform_2, window_bounds = array<i64: 1, 512, 128>}, {transform_indices = @transform_3, window_bounds = array<i64: 1, 2, 128>}]} {
    %c0 = arith.constant 0 : index
    %c0_0 = arith.constant 0 : index
    %c0_1 = arith.constant 0 : index
    %0 = vector.load %arg2[%c0, %c0_0, %c0_1] : memref<1x512x16xbf16, #tpu.memory_space<vmem>>, vector<1x512x16xbf16>
    %1 = vector.shape_cast %0 : vector<1x512x16xbf16> to vector<512x16xbf16>
    %c0_2 = arith.constant 0 : index
    %c0_3 = arith.constant 0 : index
    %c0_4 = arith.constant 0 : index
    %2 = vector.load %arg3[%c0_2, %c0_3, %c0_4] : memref<1x16x128xbf16, #tpu.memory_space<vmem>>, vector<1x16x128xbf16>
    %3 = vector.shape_cast %2 : vector<1x16x128xbf16> to vector<16x128xbf16>
    %cst = arith.constant dense<0.000000e+00> : vector<512x128xf32>
    %4 = tpu.matmul %1, %3, %cst {dimension_numbers = #tpu.dot_dimension_numbers<[1], [0], [0], [1], [0, 0, 1, 1], [], []>} : vector<512x16xbf16>, vector<16x128xbf16>, vector<512x128xf32> -> vector<512x128xf32>
    %c0_5 = arith.constant 0 : index
    %c0_6 = arith.constant 0 : index
    %c0_7 = arith.constant 0 : index
    %5 = vector.load %arg4[%c0_5, %c0_6, %c0_7] : memref<1x512x128xf32, #tpu.memory_space<vmem>>, vector<1x512x128xf32>
    %6 = vector.shape_cast %5 : vector<1x512x128xf32> to vector<512x128xf32>
    %7 = vector.shape_cast %4 : vector<512x128xf32> to vector<1x512x128xf32>
    tpu.vector_store %arg4[%c0_5, %c0_6, %c0_7], %7 {strides = array<i32>} : memref<1x512x128xf32, #tpu.memory_space<vmem>>, vector<1x512x128xf32>,
    %cst_8 = arith.constant dense<0.000000e+00> : vector<128xf32>
    %8 = vector.multi_reduction <add>, %4, %cst_8 [0] : vector<512x128xf32> to vector<128xf32>
    %9 = vector.shape_cast %8 : vector<128xf32> to vector<1x128xf32>
    %c0_9 = arith.constant 0 : index
    %c0_10 = arith.constant 0 : index
    %c0_11 = arith.constant 0 : index
    %10 = vector.load %arg5[%c0_9, %c0_10, %c0_11] : memref<1x2x128xf32, #tpu.memory_space<vmem>>, vector<1x1x128xf32>
    %11 = vector.shape_cast %10 : vector<1x1x128xf32> to vector<1x128xf32>
    %12 = vector.shape_cast %9 : vector<1x128xf32> to vector<1x1x128xf32>
    tpu.vector_store %arg5[%c0_9, %c0_10, %c0_11], %12 {strides = array<i32>} : memref<1x2x128xf32, #tpu.memory_space<vmem>>, vector<1x1x128xf32>,
    %13 = arith.mulf %4, %4 : vector<512x128xf32>
    %cst_12 = arith.constant dense<0.000000e+00> : vector<128xf32>
    %14 = vector.multi_reduction <add>, %13, %cst_12 [0] : vector<512x128xf32> to vector<128xf32>
    %15 = vector.shape_cast %14 : vector<128xf32> to vector<1x128xf32>
    %c0_13 = arith.constant 0 : index
    %c1 = arith.constant 1 : index
    %c0_14 = arith.constant 0 : index
    %16 = vector.load %arg5[%c0_13, %c1, %c0_14] : memref<1x2x128xf32, #tpu.memory_space<vmem>>, vector<1x1x128xf32>
    %17 = vector.shape_cast %16 : vector<1x1x128xf32> to vector<1x128xf32>
    %18 = vector.shape_cast %15 : vector<1x128xf32> to vector<1x1x128xf32>
    tpu.vector_store %arg5[%c0_13, %c1, %c0_14], %18 {strides = array<i32>} : memref<1x2x128xf32, #tpu.memory_space<vmem>>, vector<1x1x128xf32>,
    return
  }
  func.func @transform_0(%arg0: i32, %arg1: i32) -> (i32, i32, i32) {
    %c0_i32 = arith.constant 0 : i32
    %c0_i32_0 = arith.constant 0 : i32
    return %arg0, %arg1, %c0_i32 : i32, i32, i32
  }
  func.func @transform_1(%arg0: i32, %arg1: i32) -> (i32, i32, i32) {
    %c0_i32 = arith.constant 0 : i32
    %c0_i32_0 = arith.constant 0 : i32
    %c0_i32_1 = arith.constant 0 : i32
    return %arg0, %c0_i32, %c0_i32_0 : i32, i32, i32
  }
  func.func @transform_2(%arg0: i32, %arg1: i32) -> (i32, i32, i32) {
    %c0_i32 = arith.constant 0 : i32
    %c0_i32_0 = arith.constant 0 : i32
    return %arg0, %arg1, %c0_i32 : i32, i32, i32
  }
  func.func @transform_3(%arg0: i32, %arg1: i32) -> (i32, i32, i32) {
    %c1_i32 = arith.constant 1 : i32
    %0 = arith.muli %arg0, %c1_i32 : i32
    %1 = arith.addi %0, %arg1 : i32
    %c0_i32 = arith.constant 0 : i32
    %c0_i32_0 = arith.constant 0 : i32
    %c0_i32_1 = arith.constant 0 : i32
    return %1, %c0_i32, %c0_i32_0 : i32, i32, i32
  }
}

module attributes {stable_mosaic.version = 11 : i64} {
  func.func @_bn_affine_kernel(%arg0: i32, %arg1: i32, %arg2: memref<1x512x128xf32, #tpu.memory_space<vmem>>, %arg3: memref<2x128xf32, #tpu.memory_space<vmem>>, %arg4: memref<1x512x128xf32, #tpu.memory_space<vmem>>) attributes {dimension_semantics = [#tpu.dimension_semantics<parallel>, #tpu.dimension_semantics<parallel>], iteration_bounds = array<i64: 4, 1>, scalar_prefetch = 0 : i64, scratch_operands = 0 : i64, tpu.core_type = #tpu.core_type<tc>, window_params = [{transform_indices = @transform_0, window_bounds = array<i64: 1, 512, 128>}, {pipeline_mode = #tpu.pipeline_mode<synchronous>, transform_indices = @transform_1, window_bounds = array<i64: 2, 128>}, {transform_indices = @transform_2, window_bounds = array<i64: 1, 512, 128>}]} {
    %c0 = arith.constant 0 : index
    %c0_0 = arith.constant 0 : index
    %c0_1 = arith.constant 0 : index
    %0 = vector.load %arg2[%c0, %c0_0, %c0_1] : memref<1x512x128xf32, #tpu.memory_space<vmem>>, vector<1x512x128xf32>
    %1 = vector.shape_cast %0 : vector<1x512x128xf32> to vector<512x128xf32>
    %c0_2 = arith.constant 0 : index
    %c0_3 = arith.constant 0 : index
    %2 = vector.load %arg3[%c0_2, %c0_3] : memref<2x128xf32, #tpu.memory_space<vmem>>, vector<1x128xf32>
    %3 = vector.broadcast %2 : vector<1x128xf32> to vector<512x128xf32>
    %4 = arith.mulf %1, %3 : vector<512x128xf32>
    %c1 = arith.constant 1 : index
    %c0_4 = arith.constant 0 : index
    %5 = vector.load %arg3[%c1, %c0_4] : memref<2x128xf32, #tpu.memory_space<vmem>>, vector<1x128xf32>
    %6 = vector.broadcast %5 : vector<1x128xf32> to vector<512x128xf32>
    %7 = arith.addf %4, %6 : vector<512x128xf32>
    %c0_5 = arith.constant 0 : index
    %c0_6 = arith.constant 0 : index
    %c0_7 = arith.constant 0 : index
    %8 = vector.load %arg4[%c0_5, %c0_6, %c0_7] : memref<1x512x128xf32, #tpu.memory_space<vmem>>, vector<1x512x128xf32>
    %9 = vector.shape_cast %8 : vector<1x512x128xf32> to vector<512x128xf32>
    %10 = vector.shape_cast %7 : vector<512x128xf32> to vector<1x512x128xf32>
    tpu.vector_store %arg4[%c0_5, %c0_6, %c0_7], %10 {strides = array<i32>} : memref<1x512x128xf32, #tpu.memory_space<vmem>>, vector<1x512x128xf32>,
    return
  }
  func.func @transform_0(%arg0: i32, %arg1: i32) -> (i32, i32, i32) {
    %c0_i32 = arith.constant 0 : i32
    %c0_i32_0 = arith.constant 0 : i32
    return %arg0, %arg1, %c0_i32 : i32, i32, i32
  }
  func.func @transform_1(%arg0: i32, %arg1: i32) -> (i32, i32) {
    %c0_i32 = arith.constant 0 : i32
    %c0_i32_0 = arith.constant 0 : i32
    %c0_i32_1 = arith.constant 0 : i32
    return %c0_i32, %c0_i32_0 : i32, i32
  }
  func.func @transform_2(%arg0: i32, %arg1: i32) -> (i32, i32, i32) {
    %c0_i32 = arith.constant 0 : i32
    %c0_i32_0 = arith.constant 0 : i32
    return %arg0, %arg1, %c0_i32 : i32, i32, i32
  }
}

</mosaic_0001>

<bundles_post_ra>
// kernel: upsample_conv_forward.2
= control target key start
LH: loop header
LB: loop body
LE: loop exit
PB: predicated region body
PF: predicated region fallthrough
CT: control target
= control target key end

     0   :  { %s1431_s12 = smov 0   ;;  %s1433_s13 = smov 0   ;;  %s1896_s0 = inlined_call_operand.vmem [shape: bf16[4,512,16], index: 0, kind: input, shape index: {}]   ;;  %s1897_s1 = inlined_call_operand.vmem [shape: bf16[4,16,128], index: 1, kind: input, shape index: {}]   ;;  %s1898_s2 = inlined_call_operand.vmem [shape: f32[4,512,128], index: 2, kind: output, shape index: {0}]   ;;  %s1899_s3 = inlined_call_operand.vmem [shape: f32[4,2,128], index: 3, kind: output, shape index: {1}]  }
   0x1   :  { %s1435_s14 = smov 0  }
   0x2 LB: > { %s26_s15 = sadd.s32 1, %s1405_s13  ;;  %p1150_p0 = scmp.ge.s32.totalorder %s1409_s14, 1  ;;  %s1409_s14 = sphi %s1435_s14, %s14_s14   ;;  %s1405_s13 = sphi %s1433_s13, %s1901_s13   ;;  %s1401_s12 = sphi %s1431_s12, %s1900_s12  }
   0x3   : > { %p28_p1 = scmp.ge.s32.totalorder %s26_s15, 4  ;;  %p173_p2 = scmp.lt.s32.totalorder %s1409_s14, 5 }
   0x5   : > { %s1903_s15 = smov (%p28_p1, %s26_s15), 0  ;;  %p174_p3 = pnand %p1150_p0, %p173_p2 }
   0x6   : > { %p216_p4 = scmp.lt.s32.totalorder (!%p174_p3), %s1401_s12, 3 }
   0x7   : > { %177 = sbr.rel (%p174_p3) target bundleno = 378 (0x17a), region = 28 }
   0xc   : > { %s1905_s12 = smov (!%p216_p4, %s1401_s12), 3  ;;  %vm479_vm0 = vcmask 130048  }
   0xd   : > { %s1324_s16 = sshll.u32 %s1905_s12, 8  ;;  %s1325_s17 = sshll.u32 %s1905_s12, 3 }
   0xe   : > { %s1456_s20 = scalar_lea.vmem %s1896_s0, %s1324_s16  ;;  %s229_s23 = scalar_lea.vmem %s1897_s1, %s1325_s17 }
   0xf   : > { %v1359_v0 = vld [vmem:[%s229_s23] sm:$0xff]  ;;  %v1328_v3 = vld [vmem:[%s1456_s20 + $0x8] sm:$0xff]  ;;  %v1329_v6 = vld [vmem:[%s1456_s20 + $0x10] sm:$0xff]  ;;  %s1326_s24 = sshll.u32 %s1905_s12, 9  ;;  %s1157_s28 = sshll.u32 %s1905_s12, 1 }
  0x10   : > { %v1327_v1 = vld [vmem:[%s1456_s20] sm:$0xff]  ;;  %583 = vmatpush.bf16.msra.mxu0 %v1359_v0  ;;  %1360 = vmatpush.bf16.msra.mxu1 %v1359_v0  ;;  %v1336_v4 = vld [vmem:[%s1456_s20 + $0x48] sm:$0xff]  ;;  %v1337_v7 = vld [vmem:[%s1456_s20 + $0x50] sm:$0xff]  ;;  %s1521_s27 = scalar_lea.vmem %s1898_s2, %s1326_s24  ;;  %s244_s4 = scalar_lea.vmem %s1899_s3, %s1157_s28 }
  0x11   : > { %v1335_v2 = vld [vmem:[%s1456_s20 + $0x40] sm:$0xff]  ;;  %1361 = vmatpush.bf16.msra.mxu2 %v1359_v0  ;;  %1362 = vmatpush.bf16.msra.mxu3 %v1359_v0  ;;  %v1344_v8 = vld [vmem:[%s1456_s20 + $0x88] sm:$0xff]  ;;  %v1330_v9 = vld [vmem:[%s1456_s20 + $0x18] sm:$0xff] }
  0x12   : > { %v1343_v5 = vld [vmem:[%s1456_s20 + $0x80] sm:$0xff]  ;;  %v1338_v10 = vld [vmem:[%s1456_s20 + $0x58] sm:$0xff]  ;;  %v1345_v11 = vld [vmem:[%s1456_s20 + $0x90] sm:$0xff] }
  0x13   : > { %1290 = vmatmul.msk.bf16.vlgmr.msra.gmra.mxu0 %vm479_vm0, %v1327_v1  ;;  %1298 = vmatmul.msk.bf16.vlgmr.msra.gmra.mxu1 %vm479_vm0, %v1335_v2  ;;  %v1351_v12 = vld [vmem:[%s1456_s20 + $0xc0] sm:$0xff]  ;;  %v1346_v15 = vld [vmem:[%s1456_s20 + $0x98] sm:$0xff]  ;;  %v1352_v16 = vld [vmem:[%s1456_s20 + $0xc8] sm:$0xff] }
  0x14   : > { %1306 = vmatmul.msk.bf16.vlgmr.msra.gmra.mxu2 %vm479_vm0, %v1343_v5  ;;  %1314 = vmatmul.msk.bf16.vlgmr.msra.gmra.mxu3 %vm479_vm0, %v1351_v12  ;;  %v1331_v13 = vld [vmem:[%s1456_s20 + $0x20] sm:$0xff]  ;;  %v1332_v17 = vld [vmem:[%s1456_s20 + $0x28] sm:$0xff]  ;;  %v1353_v20 = vld [vmem:[%s1456_s20 + $0xd0] sm:$0xff] }
  0x15   : > { %v1339_v14 = vld [vmem:[%s1456_s20 + $0x60] sm:$0xff]  ;;  %v1340_v18 = vld [vmem:[%s1456_s20 + $0x68] sm:$0xff]  ;;  %v1333_v21 = vld [vmem:[%s1456_s20 + $0x30] sm:$0xff] }
  0x16   : > { %v1347_v19 = vld [vmem:[%s1456_s20 + $0xa0] sm:$0xff]  ;;  %v1341_v22 = vld [vmem:[%s1456_s20 + $0x70] sm:$0xff]  ;;  %v1348_v23 = vld [vmem:[%s1456_s20 + $0xa8] sm:$0xff] }
  0x17   : > { %v1354_v24 = vld [vmem:[%s1456_s20 + $0xd8] sm:$0xff]  ;;  %v1349_v27 = vld [vmem:[%s1456_s20 + $0xb0] sm:$0xff]  ;;  %v1355_v28 = vld [vmem:[%s1456_s20 + $0xe0] sm:$0xff] }
  0x18   : > { %v1334_v25 = vld [vmem:[%s1456_s20 + $0x38] sm:$0xff]  ;;  %v1356_v32 = vld [vmem:[%s1456_s20 + $0xe8] sm:$0xff]  ;;  %v1357_v44 = vld [vmem:[%s1456_s20 + $0xf0] sm:$0xff] }
  0x19   : > { %v1342_v26 = vld [vmem:[%s1456_s20 + $0x78] sm:$0xff] }
  0x1a   : > { %v1350_v31 = vld [vmem:[%s1456_s20 + $0xb8] sm:$0xff] }
  0x1b   : > { %v1358_v57 = vld [vmem:[%s1456_s20 + $0xf8] sm:$0xff] }
  0x23   : > { %1291 = vmatmul.msk.bf16.gmra.mxu0 %vm479_vm0, %v1328_v3  ;;  %1299 = vmatmul.msk.bf16.gmra.mxu1 %vm479_vm0, %v1336_v4 }
  0x24   : > { %1307 = vmatmul.msk.bf16.gmra.mxu2 %vm479_vm0, %v1344_v8  ;;  %1315 = vmatmul.msk.bf16.gmra.mxu3 %vm479_vm0, %v1352_v16 }
  0x33   : > { %1292 = vmatmul.msk.bf16.gmra.mxu0 %vm479_vm0, %v1329_v6  ;;  %1300 = vmatmul.msk.bf16.gmra.mxu1 %vm479_vm0, %v1337_v7 }
  0x34   : > { %1308 = vmatmul.msk.bf16.gmra.mxu2 %vm479_vm0, %v1345_v11  ;;  %1316 = vmatmul.msk.bf16.gmra.mxu3 %vm479_vm0, %v1353_v20 }
  0x43   : > { %1293 = vmatmul.msk.bf16.gmra.mxu0 %vm479_vm0, %v1330_v9  ;;  %1301 = vmatmul.msk.bf16.gmra.mxu1 %vm479_vm0, %v1338_v10 }
  0x44   : > { %1309 = vmatmul.msk.bf16.gmra.mxu2 %vm479_vm0, %v1346_v15  ;;  %1317 = vmatmul.msk.bf16.gmra.mxu3 %vm479_vm0, %v1354_v24 }
  0x53   : > { %1294 = vmatmul.msk.bf16.gmra.mxu0 %vm479_vm0, %v1331_v13  ;;  %1302 = vmatmul.msk.bf16.gmra.mxu1 %vm479_vm0, %v1339_v14 }
  0x54   : > { %1310 = vmatmul.msk.bf16.gmra.mxu2 %vm479_vm0, %v1347_v19  ;;  %1318 = vmatmul.msk.bf16.gmra.mxu3 %vm479_vm0, %v1355_v28 }
  0x63   : > { %1295 = vmatmul.msk.bf16.gmra.mxu0 %vm479_vm0, %v1332_v17  ;;  %1303 = vmatmul.msk.bf16.gmra.mxu1 %vm479_vm0, %v1340_v18 }
  0x64   : > { %1311 = vmatmul.msk.bf16.gmra.mxu2 %vm479_vm0, %v1348_v23  ;;  %1319 = vmatmul.msk.bf16.gmra.mxu3 %vm479_vm0, %v1356_v32 }
  0x73   : > { %1296 = vmatmul.msk.bf16.gmra.mxu0 %vm479_vm0, %v1333_v21  ;;  %1304 = vmatmul.msk.bf16.gmra.mxu1 %vm479_vm0, %v1341_v22 }
  0x74   : > { %1312 = vmatmul.msk.bf16.gmra.mxu2 %vm479_vm0, %v1349_v27  ;;  %1320 = vmatmul.msk.bf16.gmra.mxu3 %vm479_vm0, %v1357_v44 }
  0x83   : > { %1297 = vmatmul.msk.bf16.gmra.mxu0 %vm479_vm0, %v1334_v25  ;;  %1305 = vmatmul.msk.bf16.gmra.mxu1 %vm479_vm0, %v1342_v26 }
  0x84   : > { %1313 = vmatmul.msk.bf16.gmra.mxu2 %vm479_vm0, %v1350_v31  ;;  %1321 = vmatmul.msk.bf16.gmra.mxu3 %vm479_vm0, %v1358_v57 }
  0x90   : > { %v585_v29 = vpop.f32.mrf.mxu0  ;;  %v1523_v30 = vpop.f32.mrf.mxu1 }
  0x91   : > { %745 = vst [vmem:[%s1521_s27] sm:$0xff] %v585_v29  ;;  %v879_v35 = vmul.f32 %v585_v29, %v585_v29 }
  0x92   : > { %761 = vst [vmem:[%s1521_s27 + $0x80] sm:$0xff] %v1523_v30 }
  0x97   : > { %v1547_v49 = vpop.f32.mrf.mxu2  ;;  %v1591_v3 = vpop.f32.mrf.mxu3 }
  0x98   : > { %v587_v33 = vpop.f32.mrf.mxu0  ;;  %v1532_v34 = vpop.f32.mrf.mxu1  ;;  %777 = vst [vmem:[%s1521_s27 + $0x100] sm:$0xff] %v1547_v49 }
  0x99   : > { %746 = vst [vmem:[%s1521_s27 + $0x8] sm:$0xff] %v587_v33  ;;  %v809_v36 = vadd.f32 %v587_v33, %v585_v29  ;;  %v880_v37 = vmul.f32 %v587_v33, %v587_v33 }
  0x9a   : > { %762 = vst [vmem:[%s1521_s27 + $0x88] sm:$0xff] %v1532_v34 }
  0x9b   : > { %v943_v38 = vadd.f32 %v880_v37, %v879_v35  ;;  %793 = vst [vmem:[%s1521_s27 + $0x180] sm:$0xff] %v1591_v3 }
  0x9f   : > { %v1558_v55 = vpop.f32.mrf.mxu2  ;;  %v1604_v7 = vpop.f32.mrf.mxu3 }
  0xa0   : > { %v590_v39 = vpop.f32.mrf.mxu0  ;;  %v1537_v40 = vpop.f32.mrf.mxu1  ;;  %778 = vst [vmem:[%s1521_s27 + $0x108] sm:$0xff] %v1558_v55 }
  0xa1   : > { %747 = vst [vmem:[%s1521_s27 + $0x10] sm:$0xff] %v590_v39  ;;  %v810_v41 = vadd.f32 %v809_v36, %v590_v39  ;;  %v881_v42 = vmul.f32 %v590_v39, %v590_v39 }
  0xa2   : > { %763 = vst [vmem:[%s1521_s27 + $0x90] sm:$0xff] %v1537_v40 }
  0xa3   : > { %v944_v43 = vadd.f32 %v943_v38, %v881_v42  ;;  %794 = vst [vmem:[%s1521_s27 + $0x188] sm:$0xff] %v1604_v7 }
  0xa7   : > { %v1571_v60 = vpop.f32.mrf.mxu2  ;;  %v1617_v11 = vpop.f32.mrf.mxu3 }
  0xa8   : > { %v592_v45 = vpop.f32.mrf.mxu0  ;;  %v1544_v46 = vpop.f32.mrf.mxu1  ;;  %779 = vst [vmem:[%s1521_s27 + $0x110] sm:$0xff] %v1571_v60 }
  0xa9   : > { %748 = vst [vmem:[%s1521_s27 + $0x18] sm:$0xff] %v592_v45  ;;  %v811_v47 = vadd.f32 %v810_v41, %v592_v45  ;;  %v882_v48 = vmul.f32 %v592_v45, %v592_v45 }
  0xaa   : > { %764 = vst [vmem:[%s1521_s27 + $0x98] sm:$0xff] %v1544_v46 }
  0xab   : > { %v945_v50 = vadd.f32 %v944_v43, %v882_v48  ;;  %795 = vst [vmem:[%s1521_s27 + $0x190] sm:$0xff] %v1617_v11 }
  0xaf   : > { %v1580_v63 = vpop.f32.mrf.mxu2  ;;  %v1630_v15 = vpop.f32.mrf.mxu3 }
  0xb0   : > { %v595_v51 = vpop.f32.mrf.mxu0  ;;  %v1553_v52 = vpop.f32.mrf.mxu1  ;;  %780 = vst [vmem:[%s1521_s27 + $0x118] sm:$0xff] %v1580_v63 }
  0xb1   : > { %749 = vst [vmem:[%s1521_s27 + $0x20] sm:$0xff] %v595_v51  ;;  %v1556_v53 = vadd.f32 %v811_v47, %v595_v51  ;;  %v883_v54 = vmul.f32 %v595_v51, %v595_v51 }
  0xb2   : > { %765 = vst [vmem:[%s1521_s27 + $0xa0] sm:$0xff] %v1553_v52 }
  0xb3   : > { %v1562_v56 = vadd.f32 %v945_v50, %v883_v54  ;;  %796 = vst [vmem:[%s1521_s27 + $0x198] sm:$0xff] %v1630_v15 }
  0xb7   : > { %v1589_v2 = vpop.f32.mrf.mxu2  ;;  %v1643_v19 = vpop.f32.mrf.mxu3 }
  0xb8   : > { %v597_v58 = vpop.f32.mrf.mxu0  ;;  %v1568_v59 = vpop.f32.mrf.mxu1  ;;  %781 = vst [vmem:[%s1521_s27 + $0x120] sm:$0xff] %v1589_v2 }
  0xb9   : > { %750 = vst [vmem:[%s1521_s27 + $0x28] sm:$0xff] %v597_v58  ;;  %v884_v24 = vmul.f32 %v597_v58, %v597_v58  ;;  %v813_v25 = vadd.f32 %v1556_v53, %v597_v58 }
  0xba   : > { %766 = vst [vmem:[%s1521_s27 + $0xa8] sm:$0xff] %v1568_v59 }
  0xbb   : > { %797 = vst [vmem:[%s1521_s27 + $0x1a0] sm:$0xff] %v1643_v19  ;;  %v947_v27 = vadd.f32 %v1562_v56, %v884_v24 }
  0xbf   : > { %v1602_v6 = vpop.f32.mrf.mxu2  ;;  %v1656_v23 = vpop.f32.mrf.mxu3 }
  0xc0   : > { %v600_v61 = vpop.f32.mrf.mxu0  ;;  %v1577_v62 = vpop.f32.mrf.mxu1  ;;  %782 = vst [vmem:[%s1521_s27 + $0x128] sm:$0xff] %v1602_v6 }
  0xc1   : > { %751 = vst [vmem:[%s1521_s27 + $0x30] sm:$0xff] %v600_v61  ;;  %v885_v26 = vmul.f32 %v600_v61, %v600_v61  ;;  %v814_v28 = vadd.f32 %v813_v25, %v600_v61 }
  0xc2   : > { %767 = vst [vmem:[%s1521_s27 + $0xb0] sm:$0xff] %v1577_v62 }
  0xc3   : > { %798 = vst [vmem:[%s1521_s27 + $0x1a8] sm:$0xff] %v1656_v23  ;;  %v948_v33 = vadd.f32 %v947_v27, %v885_v26 }
  0xc7   : > { %v1615_v10 = vpop.f32.mrf.mxu2  ;;  %v1671_v38 = vpop.f32.mrf.mxu3 }
  0xc8   : > { %v602_v0 = vpop.f32.mrf.mxu0  ;;  %v1586_v1 = vpop.f32.mrf.mxu1  ;;  %783 = vst [vmem:[%s1521_s27 + $0x130] sm:$0xff] %v1615_v10 }
  0xc9   : > { %752 = vst [vmem:[%s1521_s27 + $0x38] sm:$0xff] %v602_v0  ;;  %v886_v29 = vmul.f32 %v602_v0, %v602_v0  ;;  %v815_v35 = vadd.f32 %v814_v28, %v602_v0 }
  0xca   : > { %768 = vst [vmem:[%s1521_s27 + $0xb8] sm:$0xff] %v1586_v1 }
  0xcb   : > { %v949_v39 = vadd.f32 %v948_v33, %v886_v29  ;;  %799 = vst [vmem:[%s1521_s27 + $0x1b0] sm:$0xff] %v1671_v38 }
  0xcf   : > { %v1628_v14 = vpop.f32.mrf.mxu2  ;;  %v1684_v61 = vpop.f32.mrf.mxu3 }
  0xd0   : > { %v605_v4 = vpop.f32.mrf.mxu0  ;;  %v1599_v5 = vpop.f32.mrf.mxu1  ;;  %784 = vst [vmem:[%s1521_s27 + $0x138] sm:$0xff] %v1628_v14 }
  0xd1   : > { %753 = vst [vmem:[%s1521_s27 + $0x40] sm:$0xff] %v605_v4  ;;  %v887_v36 = vmul.f32 %v605_v4, %v605_v4  ;;  %v816_v41 = vadd.f32 %v815_v35, %v605_v4 }
  0xd2   : > { %769 = vst [vmem:[%s1521_s27 + $0xc0] sm:$0xff] %v1599_v5 }
  0xd3   : > { %v950_v43 = vadd.f32 %v949_v39, %v887_v36  ;;  %800 = vst [vmem:[%s1521_s27 + $0x1b8] sm:$0xff] %v1684_v61 }
  0xd7   : > { %v1641_v18 = vpop.f32.mrf.mxu2  ;;  %v1697_v36 = vpop.f32.mrf.mxu3 }
  0xd8   : > { %v607_v8 = vpop.f32.mrf.mxu0  ;;  %v1612_v9 = vpop.f32.mrf.mxu1  ;;  %785 = vst [vmem:[%s1521_s27 + $0x140] sm:$0xff] %v1641_v18 }
  0xd9   : > { %754 = vst [vmem:[%s1521_s27 + $0x48] sm:$0xff] %v607_v8  ;;  %v888_v42 = vmul.f32 %v607_v8, %v607_v8  ;;  %v817_v44 = vadd.f32 %v816_v41, %v607_v8 }
  0xda   : > { %770 = vst [vmem:[%s1521_s27 + $0xc8] sm:$0xff] %v1612_v9 }
  0xdb   : > { %v951_v47 = vadd.f32 %v950_v43, %v888_v42  ;;  %801 = vst [vmem:[%s1521_s27 + $0x1c0] sm:$0xff] %v1697_v36  ;;  %v896_v42 = vmul.f32 %v1532_v34, %v1532_v34 }
  0xdf   : > { %v1654_v22 = vpop.f32.mrf.mxu2 }
  0xe0   : > { %v610_v12 = vpop.f32.mrf.mxu0  ;;  %v1625_v13 = vpop.f32.mrf.mxu1  ;;  %786 = vst [vmem:[%s1521_s27 + $0x148] sm:$0xff] %v1654_v22 }
  0xe1   : > { %755 = vst [vmem:[%s1521_s27 + $0x50] sm:$0xff] %v610_v12  ;;  %v889_v45 = vmul.f32 %v610_v12, %v610_v12  ;;  %v818_v48 = vadd.f32 %v817_v44, %v610_v12 }
  0xe2   : > { %771 = vst [vmem:[%s1521_s27 + $0xd0] sm:$0xff] %v1625_v13 }
  0xe3   : > { %v952_v54 = vadd.f32 %v951_v47, %v889_v45  ;;  %v897_v45 = vmul.f32 %v1537_v40, %v1537_v40 }
  0xe7   : > { %v1669_v37 = vpop.f32.mrf.mxu2 }
  0xe8   : > { %v612_v16 = vpop.f32.mrf.mxu0  ;;  %v1638_v17 = vpop.f32.mrf.mxu1  ;;  %787 = vst [vmem:[%s1521_s27 + $0x150] sm:$0xff] %v1669_v37 }
  0xe9   : > { %756 = vst [vmem:[%s1521_s27 + $0x58] sm:$0xff] %v612_v16  ;;  %v890_v50 = vmul.f32 %v612_v16, %v612_v16  ;;  %v819_v56 = vadd.f32 %v818_v48, %v612_v16 }
  0xea   : > { %772 = vst [vmem:[%s1521_s27 + $0xd8] sm:$0xff] %v1638_v17 }
  0xeb   : > { %v953_v0 = vadd.f32 %v952_v54, %v890_v50 }
  0xef   : > { %v1682_v58 = vpop.f32.mrf.mxu2 }
  0xf0   : > { %v615_v20 = vpop.f32.mrf.mxu0  ;;  %v1651_v21 = vpop.f32.mrf.mxu1  ;;  %788 = vst [vmem:[%s1521_s27 + $0x158] sm:$0xff] %v1682_v58 }
  0xf1   : > { %757 = vst [vmem:[%s1521_s27 + $0x60] sm:$0xff] %v615_v20  ;;  %v891_v57 = vmul.f32 %v615_v20, %v615_v20  ;;  %v820_v4 = vadd.f32 %v819_v56, %v615_v20  ;;  %v1719_v56 = vpop.f32.mrf.mxu3 }
  0xf2   : > { %773 = vst [vmem:[%s1521_s27 + $0xe0] sm:$0xff] %v1651_v21 }
  0xf3   : > { %v954_v12 = vadd.f32 %v953_v0, %v891_v57  ;;  %802 = vst [vmem:[%s1521_s27 + $0x1c8] sm:$0xff] %v1719_v56 }
  0xf7   : > { %v1695_v35 = vpop.f32.mrf.mxu2 }
  0xf8   : > { %v617_v31 = vpop.f32.mrf.mxu0  ;;  %v1666_v32 = vpop.f32.mrf.mxu1  ;;  %789 = vst [vmem:[%s1521_s27 + $0x160] sm:$0xff] %v1695_v35 }
  0xf9   : > { %758 = vst [vmem:[%s1521_s27 + $0x68] sm:$0xff] %v617_v31  ;;  %v892_v8 = vmul.f32 %v617_v31, %v617_v31  ;;  %v821_v24 = vadd.f32 %v820_v4, %v617_v31  ;;  %v895_v31 = vmul.f32 %v1523_v30, %v1523_v30 }
  0xfa   : > { %774 = vst [vmem:[%s1521_s27 + $0xe8] sm:$0xff] %v1666_v32 }
  0xfb   : > { %v955_v25 = vadd.f32 %v954_v12, %v892_v8  ;;  %v901_v8 = vmul.f32 %v1577_v62, %v1577_v62 }
  0xff   : > { %v1717_v54 = vpop.f32.mrf.mxu2 }
 0x100   : > { %v620_v51 = vpop.f32.mrf.mxu0  ;;  %v1679_v53 = vpop.f32.mrf.mxu1  ;;  %790 = vst [vmem:[%s1521_s27 + $0x168] sm:$0xff] %v1717_v54 }
 0x101   : > { %759 = vst [vmem:[%s1521_s27 + $0x70] sm:$0xff] %v620_v51  ;;  %v893_v16 = vmul.f32 %v620_v51, %v620_v51  ;;  %v822_v26 = vadd.f32 %v821_v24, %v620_v51 }
 0x102   : > { %775 = vst [vmem:[%s1521_s27 + $0xf0] sm:$0xff] %v1679_v53 }
 0x103   : > { %v956_v29 = vadd.f32 %v955_v25, %v893_v16  ;;  %v902_v16 = vmul.f32 %v1586_v1, %v1586_v1 }
 0x108   : > { %v622_v27 = vpop.f32.mrf.mxu0  ;;  %v1692_v28 = vpop.f32.mrf.mxu1 }
 0x109   : > { %760 = vst [vmem:[%s1521_s27 + $0x78] sm:$0xff] %v622_v27  ;;  %v823_v33 = vadd.f32 %v822_v26, %v622_v27  ;;  %v894_v20 = vmul.f32 %v622_v27, %v622_v27  ;;  %v1737_v26 = vpop.f32.mrf.mxu2  ;;  %v1739_v27 = vpop.f32.mrf.mxu3 }
 0x10a   : > { %776 = vst [vmem:[%s1521_s27 + $0xf8] sm:$0xff] %v1692_v28 }
 0x10b   : > { %v824_v39 = vadd.f32 %v823_v33, %v1523_v30  ;;  %v957_v41 = vadd.f32 %v956_v29, %v894_v20  ;;  %v898_v30 = vmul.f32 %v1544_v46, %v1544_v46  ;;  %791 = vst [vmem:[%s1521_s27 + $0x170] sm:$0xff] %v1737_v26 }
 0x10c   : > { %803 = vst [vmem:[%s1521_s27 + $0x1d0] sm:$0xff] %v1739_v27 }
 0x10d   : > { %v825_v43 = vadd.f32 %v824_v39, %v1532_v34  ;;  %v958_v44 = vadd.f32 %v957_v41, %v895_v31  ;;  %v899_v34 = vmul.f32 %v1553_v52, %v1553_v52  ;;  %v905_v31 = vmul.f32 %v1625_v13, %v1625_v13 }
 0x10f   : > { %v826_v47 = vadd.f32 %v825_v43, %v1537_v40  ;;  %v959_v48 = vadd.f32 %v958_v44, %v896_v42  ;;  %v906_v42 = vmul.f32 %v1638_v17, %v1638_v17 }
 0x111   : > { %v827_v50 = vadd.f32 %v826_v47, %v1544_v46  ;;  %v960_v51 = vadd.f32 %v959_v48, %v897_v45  ;;  %v900_v46 = vmul.f32 %v1568_v59, %v1568_v59  ;;  %v1757_v44 = vpop.f32.mrf.mxu2  ;;  %v1759_v45 = vpop.f32.mrf.mxu3  ;;  %v907_v47 = vmul.f32 %v1651_v21, %v1651_v21 }
 0x112   : > { %792 = vst [vmem:[%s1521_s27 + $0x178] sm:$0xff] %v1757_v44 }
 0x113   : > { %v828_v57 = vadd.f32 %v827_v50, %v1553_v52  ;;  %v961_v40 = vadd.f32 %v960_v51, %v898_v30  ;;  %804 = vst [vmem:[%s1521_s27 + $0x1d8] sm:$0xff] %v1759_v45 }
 0x115   : > { %v829_v0 = vadd.f32 %v828_v57, %v1568_v59  ;;  %v962_v4 = vadd.f32 %v961_v40, %v899_v34  ;;  %v903_v59 = vmul.f32 %v1599_v5, %v1599_v5  ;;  %v909_v34 = vmul.f32 %v1679_v53, %v1679_v53 }
 0x117   : > { %v963_v12 = vadd.f32 %v962_v4, %v900_v46  ;;  %v830_v24 = vadd.f32 %v829_v0, %v1577_v62  ;;  %v904_v62 = vmul.f32 %v1612_v9, %v1612_v9 }
 0x119   : > { %v831_v52 = vadd.f32 %v830_v24, %v1586_v1  ;;  %v964_v25 = vadd.f32 %v963_v12, %v901_v8  ;;  %v1777_v46 = vpop.f32.mrf.mxu3 }
 0x11a   : > { %805 = vst [vmem:[%s1521_s27 + $0x1e0] sm:$0xff] %v1777_v46 }
 0x11b   : > { %v832_v29 = vadd.f32 %v831_v52, %v1599_v5  ;;  %v965_v33 = vadd.f32 %v964_v25, %v902_v16  ;;  %v914_v52 = vmul.f32 %v1580_v63, %v1580_v63 }
 0x11d   : > { %v833_v1 = vadd.f32 %v832_v29, %v1612_v9  ;;  %v966_v20 = vadd.f32 %v965_v33, %v903_v59 }
 0x11f   : > { %v834_v39 = vadd.f32 %v833_v1, %v1625_v13  ;;  %v967_v41 = vadd.f32 %v966_v20, %v904_v62 }
 0x121   : > { %v835_v5 = vadd.f32 %v834_v39, %v1638_v17  ;;  %v968_v43 = vadd.f32 %v967_v41, %v905_v31  ;;  %v908_v17 = vmul.f32 %v1666_v32, %v1666_v32  ;;  %v918_v39 = vmul.f32 %v1628_v14, %v1628_v14 }
 0x123   : > { %v836_v9 = vadd.f32 %v835_v5, %v1651_v21  ;;  %v969_v13 = vadd.f32 %v968_v43, %v906_v42  ;;  %v910_v21 = vmul.f32 %v1692_v28, %v1692_v28 }
 0x125   : > { %v970_v48 = vadd.f32 %v969_v13, %v907_v47  ;;  %v837_v30 = vadd.f32 %v836_v9, %v1666_v32  ;;  %v911_v32 = vmul.f32 %v1547_v49, %v1547_v49 }
 0x127   : > { %v971_v50 = vadd.f32 %v970_v48, %v908_v17  ;;  %v838_v51 = vadd.f32 %v837_v30, %v1679_v53  ;;  %v912_v53 = vmul.f32 %v1558_v55, %v1558_v55  ;;  %v922_v17 = vmul.f32 %v1682_v58, %v1682_v58 }
 0x129   : > { %v972_v57 = vadd.f32 %v971_v50, %v909_v34  ;;  %v839_v40 = vadd.f32 %v838_v51, %v1692_v28  ;;  %v913_v28 = vmul.f32 %v1571_v60, %v1571_v60 }
 0x12b   : > { %v840_v0 = vadd.f32 %v839_v40, %v1547_v49  ;;  %v973_v4 = vadd.f32 %v972_v57, %v910_v21  ;;  %v1793_v49 = vpop.f32.mrf.mxu3 }
 0x12c   : > { %806 = vst [vmem:[%s1521_s27 + $0x1e8] sm:$0xff] %v1793_v49 }
 0x12d   : > { %v841_v8 = vadd.f32 %v840_v0, %v1558_v55  ;;  %v974_v12 = vadd.f32 %v973_v4, %v911_v32  ;;  %v915_v55 = vmul.f32 %v1589_v2, %v1589_v2 }
 0x12f   : > { %v842_v24 = vadd.f32 %v841_v8, %v1571_v60  ;;  %v975_v16 = vadd.f32 %v974_v12, %v912_v53  ;;  %v916_v60 = vmul.f32 %v1602_v6, %v1602_v6  ;;  %v926_v53 = vmul.f32 %v1757_v44, %v1757_v44 }
 0x131   : > { %v843_v25 = vadd.f32 %v842_v24, %v1580_v63  ;;  %v976_v59 = vadd.f32 %v975_v16, %v913_v28  ;;  %v917_v63 = vmul.f32 %v1615_v10, %v1615_v10 }
 0x133   : > { %v844_v29 = vadd.f32 %v843_v25, %v1589_v2  ;;  %v977_v33 = vadd.f32 %v976_v59, %v914_v52  ;;  %v1809_v2 = vpop.f32.mrf.mxu3 }
 0x134   : > { %807 = vst [vmem:[%s1521_s27 + $0x1f0] sm:$0xff] %v1809_v2 }
 0x135   : > { %v845_v62 = vadd.f32 %v844_v29, %v1602_v6  ;;  %v978_v1 = vadd.f32 %v977_v33, %v915_v55  ;;  %v919_v6 = vmul.f32 %v1641_v18, %v1641_v18 }
 0x137   : > { %v979_v20 = vadd.f32 %v978_v1, %v916_v60  ;;  %v846_v31 = vadd.f32 %v845_v62, %v1615_v10  ;;  %v920_v10 = vmul.f32 %v1654_v22, %v1654_v22 }
 0x139   : > { %v847_v41 = vadd.f32 %v846_v31, %v1628_v14  ;;  %v980_v42 = vadd.f32 %v979_v20, %v917_v63  ;;  %v921_v14 = vmul.f32 %v1669_v37, %v1669_v37 }
 0x13b   : > { %v848_v5 = vadd.f32 %v847_v41, %v1641_v18  ;;  %v981_v43 = vadd.f32 %v980_v42, %v918_v39  ;;  %v742_v18 = vpop.f32.mrf.mxu3 }
 0x13c   : > { %808 = vst [vmem:[%s1521_s27 + $0x1f8] sm:$0xff] %v742_v18 }
 0x13d   : > { %v849_v9 = vadd.f32 %v848_v5, %v1654_v22  ;;  %v982_v47 = vadd.f32 %v981_v43, %v919_v6  ;;  %v923_v22 = vmul.f32 %v1695_v35, %v1695_v35  ;;  %v938_v43 = vmul.f32 %v1759_v45, %v1759_v45 }
 0x13f   : > { %v850_v13 = vadd.f32 %v849_v9, %v1669_v37  ;;  %v983_v48 = vadd.f32 %v982_v47, %v920_v10  ;;  %v924_v37 = vmul.f32 %v1717_v54, %v1717_v54  ;;  %v939_v47 = vmul.f32 %v1777_v46, %v1777_v46 }
 0x141   : > { %v851_v30 = vadd.f32 %v850_v13, %v1682_v58  ;;  %v984_v50 = vadd.f32 %v983_v48, %v921_v14  ;;  %v925_v58 = vmul.f32 %v1737_v26, %v1737_v26 }
 0x143   : > { %v985_v51 = vadd.f32 %v984_v50, %v922_v17  ;;  %v852_v34 = vadd.f32 %v851_v30, %v1695_v35  ;;  %v927_v35 = vmul.f32 %v1591_v3, %v1591_v3  ;;  %v942_v50 = vmul.f32 %v742_v18, %v742_v18 }
 0x145   : > { %v986_v57 = vadd.f32 %v985_v51, %v923_v22  ;;  %v853_v40 = vadd.f32 %v852_v34, %v1717_v54  ;;  %v928_v54 = vmul.f32 %v1604_v7, %v1604_v7 }
 0x147   : > { %v987_v21 = vadd.f32 %v986_v57, %v924_v37  ;;  %v854_v32 = vadd.f32 %v853_v40, %v1737_v26  ;;  %v929_v26 = vmul.f32 %v1617_v11, %v1617_v11 }
 0x149   : > { %v988_v0 = vadd.f32 %v987_v21, %v925_v58  ;;  %v855_v4 = vadd.f32 %v854_v32, %v1757_v44  ;;  %v930_v44 = vmul.f32 %v1630_v15, %v1630_v15 }
 0x14b   : > { %v856_v8 = vadd.f32 %v855_v4, %v1591_v3  ;;  %v989_v12 = vadd.f32 %v988_v0, %v926_v53  ;;  %v931_v3 = vmul.f32 %v1643_v19, %v1643_v19 }
 0x14d   : > { %v857_v28 = vadd.f32 %v856_v8, %v1604_v7  ;;  %v990_v24 = vadd.f32 %v989_v12, %v927_v35  ;;  %v932_v7 = vmul.f32 %v1656_v23, %v1656_v23 }
 0x14f   : > { %v858_v16 = vadd.f32 %v857_v28, %v1617_v11  ;;  %v991_v52 = vadd.f32 %v990_v24, %v928_v54  ;;  %v933_v11 = vmul.f32 %v1671_v38, %v1671_v38 }
 0x151   : > { %v859_v25 = vadd.f32 %v858_v16, %v1630_v15  ;;  %v992_v59 = vadd.f32 %v991_v52, %v929_v26  ;;  %v934_v15 = vmul.f32 %v1684_v61, %v1684_v61 }
 0x153   : > { %v860_v55 = vadd.f32 %v859_v25, %v1643_v19  ;;  %v993_v29 = vadd.f32 %v992_v59, %v930_v44  ;;  %v935_v19 = vmul.f32 %v1697_v36, %v1697_v36 }
 0x155   : > { %v861_v33 = vadd.f32 %v860_v55, %v1656_v23  ;;  %v994_v60 = vadd.f32 %v993_v29, %v931_v3  ;;  %v936_v23 = vmul.f32 %v1719_v56, %v1719_v56 }
 0x157   : > { %v995_v62 = vadd.f32 %v994_v60, %v932_v7  ;;  %v862_v1 = vadd.f32 %v861_v33, %v1671_v38  ;;  %v937_v38 = vmul.f32 %v1739_v27, %v1739_v27 }
 0x159   : > { %v863_v63 = vadd.f32 %v862_v1, %v1684_v61  ;;  %v996_v20 = vadd.f32 %v995_v62, %v933_v11 }
 0x15b   : > { %v864_v31 = vadd.f32 %v863_v63, %v1697_v36  ;;  %v997_v39 = vadd.f32 %v996_v20, %v934_v15 }
 0x15d   : > { %v865_v41 = vadd.f32 %v864_v31, %v1719_v56  ;;  %v998_v42 = vadd.f32 %v997_v39, %v935_v19 }
 0x15f   : > { %v866_v6 = vadd.f32 %v865_v41, %v1739_v27  ;;  %v999_v5 = vadd.f32 %v998_v42, %v936_v23  ;;  %v940_v27 = vmul.f32 %v1793_v49, %v1793_v49 }
 0x161   : > { %v867_v61 = vadd.f32 %v866_v6, %v1759_v45  ;;  %v1000_v10 = vadd.f32 %v999_v5, %v937_v38  ;;  %v941_v45 = vmul.f32 %v1809_v2, %v1809_v2 }
 0x163   : > { %v1001_v36 = vadd.f32 %v1000_v10, %v938_v43  ;;  %v868_v9 = vadd.f32 %v867_v61, %v1777_v46 }
 0x165   : > { %v1002_v56 = vadd.f32 %v1001_v36, %v939_v47  ;;  %v869_v14 = vadd.f32 %v868_v9, %v1793_v49 }
 0x167   : > { %v1003_v13 = vadd.f32 %v1002_v56, %v940_v27  ;;  %v870_v48 = vadd.f32 %v869_v14, %v1809_v2 }
 0x169   : > { %v1004_v30 = vadd.f32 %v1003_v13, %v941_v45  ;;  %v871_v17 = vadd.f32 %v870_v48, %v742_v18 }
 0x16b   : > { %v872_v51 = vrot.slane %v871_v17, 4  ;;  %v1005_v34 = vadd.f32 %v1004_v30, %v942_v50 }
 0x16d   : > { %v873_v22 = vadd.f32 %v872_v51, %v871_v17  ;;  %v1006_v46 = vrot.slane %v1005_v34, 4 }
 0x16f   : > { %v874_v57 = vrot.slane %v873_v22, 2  ;;  %v1007_v40 = vadd.f32 %v1006_v46, %v1005_v34 }
 0x171   : > { %v875_v37 = vadd.f32 %v874_v57, %v873_v22  ;;  %v1008_v21 = vrot.slane %v1007_v40, 2 }
 0x173   : > { %v876_v32 = vrot.slane %v875_v37, 1  ;;  %v1009_v49 = vadd.f32 %v1008_v21, %v1007_v40 }
 0x175   : > { %v877_v58 = vadd.f32 %v876_v32, %v875_v37  ;;  %v1010_v2 = vrot.slane %v1009_v49, 1 }
 0x177   : > { %878 = vst [vmem:[%s244_s4] sm:$0x1] %v877_v58  ;;  %v1011_v0 = vadd.f32 %v1010_v2, %v1009_v49 }
 0x179   : > { %1012 = vst [vmem:[%s244_s4 + $0x1] sm:$0x1] %v1011_v0 }
 0x17a PF: > { %s14_s14 = sadd.s32 1, %s1409_s14   ;;  %s1900_s12 = smov %s1405_s13 }
 0x17b   : > { %p11_p5 = scmp.ge.s32.totalorder %s14_s14, 6   ;;  %s1901_s13 = smov %s1903_s15 }
 0x17d   :  { %13 = sbr.rel (!%p11_p5) target bundleno = 2 (0x2), region = 73 }

// kernel: upsample_conv_forward.3
= control target key start
LH: loop header
LB: loop body
LE: loop exit
PB: predicated region body
PF: predicated region fallthrough
CT: control target
= control target key end

     0   :  { %s608_s9 = smov 0   ;;  %s610_s10 = smov 0   ;;  %s1094_s0 = inlined_call_operand.vmem [shape: f32[4,512,128], index: 0, kind: input, shape index: {}, may-alias: {0,2}]   ;;  %s1095_s1 = inlined_call_operand.vmem [shape: f32[2,128], index: 1, kind: input, shape index: {}]   ;;  %s1096_s2 = inlined_call_operand.vmem [shape: f32[4,512,128], index: 2, kind: output, shape index: {}, may-alias: {0,2}]  }
   0x1   :  { %s612_s11 = smov 0  }
   0x2 LB: > { %s24_s12 = sadd.s32 1, %s587_s10  ;;  %p534_p0 = scmp.ge.s32.totalorder %s591_s11, 1  ;;  %s591_s11 = sphi %s612_s11, %s12_s11   ;;  %s587_s10 = sphi %s610_s10, %s1114_s10   ;;  %s583_s9 = sphi %s608_s9, %s1113_s9  }
   0x3   : > { %p26_p1 = scmp.ge.s32.totalorder %s24_s12, 4  ;;  %p133_p2 = scmp.lt.s32.totalorder %s591_s11, 5 }
   0x5   : > { %s1116_s12 = smov (%p26_p1, %s24_s12), 0  ;;  %p134_p3 = pnand %p534_p0, %p133_p2 }
   0x7   : > { %137 = sbr.rel (%p134_p3) target bundleno = 107 (0x6b), region = 28 }
   0xc   : > { %p164_p4 = scmp.lt.s32.totalorder %s583_s9, 3  ;;  %v634_v0 = vld [vmem:[%s1095_s1] ss:$0 sm:$0xff]  ;;  %v644_v6 = vld [vmem:[%s1095_s1 + $0x1] ss:$0 sm:$0xff] }
   0xe   : > { %s1118_s9 = smov (!%p164_p4, %s583_s9), 3 }
   0xf   : > { %s541_s13 = sshll.u32 %s1118_s9, 9 }
  0x10   : > { %s629_s16 = scalar_lea.vmem %s1094_s0, %s541_s13  ;;  %s672_s23 = scalar_lea.vmem %s1096_s2, %s541_s13 }
  0x11   : > { %v183_v1 = vld [vmem:[%s629_s16] sm:$0xff]  ;;  %v184_v2 = vld [vmem:[%s629_s16 + $0x8] sm:$0xff]  ;;  %v185_v3 = vld [vmem:[%s629_s16 + $0x10] sm:$0xff] }
  0x12   : > { %v186_v4 = vld [vmem:[%s629_s16 + $0x18] sm:$0xff]  ;;  %v249_v5 = vmul.f32 %v634_v0, %v183_v1  ;;  %v187_v7 = vld [vmem:[%s629_s16 + $0x20] sm:$0xff]  ;;  %v250_v8 = vmul.f32 %v634_v0, %v184_v2  ;;  %v188_v9 = vld [vmem:[%s629_s16 + $0x28] sm:$0xff]  ;;  %v251_v10 = vmul.f32 %v634_v0, %v185_v3 }
  0x13   : > { %v189_v11 = vld [vmem:[%s629_s16 + $0x30] sm:$0xff]  ;;  %v652_v12 = vmul.f32 %v634_v0, %v186_v4  ;;  %v655_v13 = vld [vmem:[%s629_s16 + $0x38] sm:$0xff]  ;;  %v658_v14 = vld [vmem:[%s629_s16 + $0x40] sm:$0xff]  ;;  %v667_v17 = vmul.f32 %v634_v0, %v187_v7  ;;  %v254_v4 = vmul.f32 %v634_v0, %v188_v9 }
  0x14   : > { %v661_v15 = vld [vmem:[%s629_s16 + $0x48] sm:$0xff]  ;;  %v664_v16 = vadd.f32 %v644_v6, %v249_v5  ;;  %v675_v18 = vld [vmem:[%s629_s16 + $0x50] sm:$0xff]  ;;  %v678_v19 = vld [vmem:[%s629_s16 + $0x58] sm:$0xff]  ;;  %v316_v3 = vadd.f32 %v644_v6, %v250_v8 }
  0x15   : > { %v681_v20 = vld [vmem:[%s629_s16 + $0x60] sm:$0xff]  ;;  %v684_v21 = vld [vmem:[%s629_s16 + $0x68] sm:$0xff]  ;;  %v687_v22 = vld [vmem:[%s629_s16 + $0x70] sm:$0xff]  ;;  %v318_v9 = vadd.f32 %v644_v6, %v652_v12 }
  0x16   : > { %v690_v23 = vld [vmem:[%s629_s16 + $0x78] sm:$0xff]  ;;  %v693_v24 = vld [vmem:[%s629_s16 + $0x80] sm:$0xff]  ;;  %v696_v25 = vld [vmem:[%s629_s16 + $0x88] sm:$0xff] }
  0x17   : > { %v699_v26 = vld [vmem:[%s629_s16 + $0x90] sm:$0xff]  ;;  %v702_v27 = vld [vmem:[%s629_s16 + $0x98] sm:$0xff]  ;;  %v705_v28 = vld [vmem:[%s629_s16 + $0xa0] sm:$0xff] }
  0x18   : > { %v708_v29 = vld [vmem:[%s629_s16 + $0xa8] sm:$0xff]  ;;  %v711_v30 = vld [vmem:[%s629_s16 + $0xb0] sm:$0xff]  ;;  %v714_v31 = vld [vmem:[%s629_s16 + $0xb8] sm:$0xff] }
  0x19   : > { %v717_v32 = vld [vmem:[%s629_s16 + $0xc0] sm:$0xff]  ;;  %v720_v33 = vld [vmem:[%s629_s16 + $0xc8] sm:$0xff]  ;;  %v723_v34 = vld [vmem:[%s629_s16 + $0xd0] sm:$0xff] }
  0x1a   : > { %v726_v35 = vld [vmem:[%s629_s16 + $0xd8] sm:$0xff]  ;;  %v729_v36 = vld [vmem:[%s629_s16 + $0xe0] sm:$0xff]  ;;  %v732_v37 = vld [vmem:[%s629_s16 + $0xe8] sm:$0xff] }
  0x1b   : > { %v735_v38 = vld [vmem:[%s629_s16 + $0xf0] sm:$0xff]  ;;  %v738_v39 = vld [vmem:[%s629_s16 + $0xf8] sm:$0xff]  ;;  %v741_v40 = vld [vmem:[%s629_s16 + $0x100] sm:$0xff] }
  0x1c   : > { %v744_v41 = vld [vmem:[%s629_s16 + $0x108] sm:$0xff]  ;;  %v747_v42 = vld [vmem:[%s629_s16 + $0x110] sm:$0xff]  ;;  %v750_v43 = vld [vmem:[%s629_s16 + $0x118] sm:$0xff] }
  0x1d   : > { %v753_v44 = vld [vmem:[%s629_s16 + $0x120] sm:$0xff]  ;;  %v756_v45 = vld [vmem:[%s629_s16 + $0x128] sm:$0xff]  ;;  %v759_v46 = vld [vmem:[%s629_s16 + $0x130] sm:$0xff] }
  0x1e   : > { %v762_v47 = vld [vmem:[%s629_s16 + $0x138] sm:$0xff]  ;;  %v765_v48 = vld [vmem:[%s629_s16 + $0x140] sm:$0xff]  ;;  %v768_v49 = vld [vmem:[%s629_s16 + $0x148] sm:$0xff] }
  0x1f   : > { %v771_v50 = vld [vmem:[%s629_s16 + $0x150] sm:$0xff]  ;;  %v774_v51 = vld [vmem:[%s629_s16 + $0x158] sm:$0xff]  ;;  %v777_v52 = vld [vmem:[%s629_s16 + $0x160] sm:$0xff] }
  0x20   : > { %v780_v53 = vld [vmem:[%s629_s16 + $0x168] sm:$0xff]  ;;  %v783_v54 = vld [vmem:[%s629_s16 + $0x170] sm:$0xff]  ;;  %v786_v55 = vld [vmem:[%s629_s16 + $0x178] sm:$0xff] }
  0x21   : > { %v789_v56 = vld [vmem:[%s629_s16 + $0x180] sm:$0xff]  ;;  %v792_v57 = vld [vmem:[%s629_s16 + $0x188] sm:$0xff]  ;;  %v795_v58 = vld [vmem:[%s629_s16 + $0x190] sm:$0xff] }
  0x22   : > { %v798_v59 = vld [vmem:[%s629_s16 + $0x198] sm:$0xff]  ;;  %v801_v60 = vld [vmem:[%s629_s16 + $0x1a0] sm:$0xff]  ;;  %v804_v61 = vld [vmem:[%s629_s16 + $0x1a8] sm:$0xff] }
  0x23   : > { %1097 = vst [vmem:[#allocation2_spill] sm:$0xff] %v804_v61  ;;  %v807_v62 = vld [vmem:[%s629_s16 + $0x1b0] sm:$0xff]  ;;  %v810_v63 = vld [vmem:[%s629_s16 + $0x1b8] sm:$0xff]  ;;  %v813_v1 = vld [vmem:[%s629_s16 + $0x1c0] sm:$0xff] }
  0x24   : > { %1098 = vst [vmem:[#allocation3_spill] sm:$0xff] %v807_v62  ;;  %v816_v2 = vld [vmem:[%s629_s16 + $0x1c8] sm:$0xff]  ;;  %v821_v5 = vld [vmem:[%s629_s16 + $0x1d0] sm:$0xff]  ;;  %v824_v7 = vld [vmem:[%s629_s16 + $0x1d8] sm:$0xff]  ;;  %v317_v62 = vadd.f32 %v644_v6, %v251_v10  ;;  %v319_v10 = vadd.f32 %v644_v6, %v667_v17 }
  0x25   : > { %1099 = vst [vmem:[#allocation4_spill] sm:$0xff] %v810_v63  ;;  %v827_v61 = vld [vmem:[%s629_s16 + $0x1e0] sm:$0xff]  ;;  %v255_v63 = vmul.f32 %v634_v0, %v189_v11  ;;  %v838_v8 = vld [vmem:[%s629_s16 + $0x1f8] sm:$0xff]  ;;  %v257_v11 = vmul.f32 %v634_v0, %v658_v14  ;;  %v260_v14 = vmul.f32 %v634_v0, %v678_v19  ;;  %v263_v19 = vmul.f32 %v634_v0, %v687_v22 }
  0x26   : > { %1100 = vst [vmem:[#allocation5_spill] sm:$0xff] %v813_v1  ;;  %v832_v1 = vld [vmem:[%s629_s16 + $0x1e8] sm:$0xff]  ;;  %v266_v22 = vmul.f32 %v634_v0, %v696_v25  ;;  %v269_v25 = vmul.f32 %v634_v0, %v705_v28  ;;  %v272_v28 = vmul.f32 %v634_v0, %v714_v31  ;;  %v275_v31 = vmul.f32 %v634_v0, %v723_v34 }
  0x27   : > { %1101 = vst [vmem:[#allocation6_spill] sm:$0xff] %v816_v2  ;;  %v835_v2 = vld [vmem:[%s629_s16 + $0x1f0] sm:$0xff]  ;;  %v321_v12 = vadd.f32 %v644_v6, %v255_v63  ;;  %v323_v17 = vadd.f32 %v644_v6, %v257_v11  ;;  %v278_v34 = vmul.f32 %v634_v0, %v732_v37  ;;  %v281_v37 = vmul.f32 %v634_v0, %v741_v40 }
  0x28   : > { %1102 = vst [vmem:[#allocation7_spill] sm:$0xff] %v824_v7  ;;  %v256_v7 = vmul.f32 %v634_v0, %v655_v13  ;;  %v259_v13 = vmul.f32 %v634_v0, %v675_v18  ;;  %v262_v18 = vmul.f32 %v634_v0, %v684_v21  ;;  %v265_v21 = vmul.f32 %v634_v0, %v693_v24 }
  0x29   : > { %1103 = vst [vmem:[#allocation8_spill] sm:$0xff] %v832_v1  ;;  %v258_v1 = vmul.f32 %v634_v0, %v661_v15  ;;  %v261_v15 = vmul.f32 %v634_v0, %v681_v20  ;;  %v264_v20 = vmul.f32 %v634_v0, %v690_v23  ;;  %v267_v23 = vmul.f32 %v634_v0, %v699_v26 }
  0x2a   : > { %1104 = vst [vmem:[#allocation9_spill] sm:$0xff] %v835_v2  ;;  %v320_v2 = vadd.f32 %v644_v6, %v254_v4  ;;  %v325_v63 = vadd.f32 %v644_v6, %v259_v13  ;;  %v329_v4 = vadd.f32 %v644_v6, %v263_v19  ;;  %v268_v24 = vmul.f32 %v634_v0, %v702_v27 }
  0x2b   : > { %379 = vst [vmem:[%s672_s23] sm:$0xff] %v664_v16  ;;  %v322_v16 = vadd.f32 %v644_v6, %v256_v7  ;;  %v330_v7 = vadd.f32 %v644_v6, %v264_v20  ;;  %v270_v26 = vmul.f32 %v634_v0, %v708_v29  ;;  %v333_v11 = vadd.f32 %v644_v6, %v267_v23 }
  0x2c   : > { %380 = vst [vmem:[%s672_s23 + $0x8] sm:$0xff] %v316_v3  ;;  %v326_v3 = vadd.f32 %v644_v6, %v260_v14  ;;  %v271_v27 = vmul.f32 %v634_v0, %v711_v30  ;;  %v335_v13 = vadd.f32 %v644_v6, %v269_v25  ;;  %v273_v29 = vmul.f32 %v634_v0, %v717_v32 }
  0x2d   : > { %381 = vst [vmem:[%s672_s23 + $0x10] sm:$0xff] %v317_v62  ;;  %v324_v62 = vadd.f32 %v644_v6, %v258_v1  ;;  %v327_v1 = vadd.f32 %v644_v6, %v261_v15  ;;  %v274_v30 = vmul.f32 %v634_v0, %v720_v33  ;;  %v276_v32 = vmul.f32 %v634_v0, %v726_v35 }
  0x2e   : > { %382 = vst [vmem:[%s672_s23 + $0x18] sm:$0xff] %v318_v9  ;;  %v331_v9 = vadd.f32 %v644_v6, %v265_v21  ;;  %v337_v14 = vadd.f32 %v644_v6, %v271_v27  ;;  %v339_v15 = vadd.f32 %v644_v6, %v273_v29  ;;  %v277_v33 = vmul.f32 %v634_v0, %v729_v36 }
  0x2f   : > { %383 = vst [vmem:[%s672_s23 + $0x20] sm:$0xff] %v319_v10  ;;  %v332_v10 = vadd.f32 %v644_v6, %v266_v22  ;;  %v279_v35 = vmul.f32 %v634_v0, %v735_v38  ;;  %v280_v36 = vmul.f32 %v634_v0, %v738_v39  ;;  %v282_v38 = vmul.f32 %v634_v0, %v744_v41 }
  0x30   : > { %384 = vst [vmem:[%s672_s23 + $0x28] sm:$0xff] %v320_v2  ;;  %v328_v2 = vadd.f32 %v644_v6, %v262_v18  ;;  %v341_v18 = vadd.f32 %v644_v6, %v275_v31  ;;  %v343_v19 = vadd.f32 %v644_v6, %v277_v33  ;;  %v283_v39 = vmul.f32 %v634_v0, %v747_v42 }
  0x31   : > { %385 = vst [vmem:[%s672_s23 + $0x30] sm:$0xff] %v321_v12  ;;  %v334_v12 = vadd.f32 %v644_v6, %v268_v24  ;;  %v345_v20 = vadd.f32 %v644_v6, %v279_v35  ;;  %v346_v40 = vadd.f32 %v644_v6, %v280_v36  ;;  %v284_v21 = vmul.f32 %v634_v0, %v750_v43  ;;  %v1109_v35 = vld [vmem:[#allocation6_spill] sm:$0xff] }
  0x32   : > { %386 = vst [vmem:[%s672_s23 + $0x38] sm:$0xff] %v322_v16  ;;  %v336_v16 = vadd.f32 %v644_v6, %v270_v26  ;;  %v347_v41 = vadd.f32 %v644_v6, %v281_v37  ;;  %v348_v42 = vadd.f32 %v644_v6, %v282_v38  ;;  %v349_v43 = vadd.f32 %v644_v6, %v283_v39 }
  0x33   : > { %387 = vst [vmem:[%s672_s23 + $0x40] sm:$0xff] %v323_v17  ;;  %v338_v17 = vadd.f32 %v644_v6, %v272_v28  ;;  %v288_v23 = vmul.f32 %v634_v0, %v762_v47  ;;  %v291_v47 = vmul.f32 %v634_v0, %v771_v50  ;;  %v294_v50 = vmul.f32 %v634_v0, %v780_v53 }
  0x34   : > { %388 = vst [vmem:[%s672_s23 + $0x48] sm:$0xff] %v324_v62  ;;  %v340_v62 = vadd.f32 %v644_v6, %v274_v30  ;;  %v297_v53 = vmul.f32 %v634_v0, %v789_v56  ;;  %v300_v56 = vmul.f32 %v634_v0, %v798_v59  ;;  %v309_v39 = vmul.f32 %v634_v0, %v827_v61 }
  0x35   : > { %389 = vst [vmem:[%s672_s23 + $0x50] sm:$0xff] %v325_v63  ;;  %v342_v63 = vadd.f32 %v644_v6, %v276_v32  ;;  %v354_v25 = vadd.f32 %v644_v6, %v288_v23  ;;  %v360_v28 = vadd.f32 %v644_v6, %v294_v50 }
  0x36   : > { %390 = vst [vmem:[%s672_s23 + $0x58] sm:$0xff] %v326_v3  ;;  %v344_v3 = vadd.f32 %v644_v6, %v278_v34  ;;  %v366_v32 = vadd.f32 %v644_v6, %v300_v56  ;;  %v375_v61 = vadd.f32 %v644_v6, %v309_v39 }
  0x37   : > { %391 = vst [vmem:[%s672_s23 + $0x60] sm:$0xff] %v327_v1  ;;  %v312_v1 = vmul.f32 %v634_v0, %v838_v8  ;;  %v286_v8 = vmul.f32 %v634_v0, %v756_v45  ;;  %v289_v45 = vmul.f32 %v634_v0, %v765_v48  ;;  %v292_v48 = vmul.f32 %v634_v0, %v774_v51 }
  0x38   : > { %392 = vst [vmem:[%s672_s23 + $0x68] sm:$0xff] %v328_v2  ;;  %v285_v2 = vmul.f32 %v634_v0, %v753_v44  ;;  %v350_v44 = vadd.f32 %v644_v6, %v284_v21  ;;  %v295_v51 = vmul.f32 %v634_v0, %v783_v54  ;;  %v298_v54 = vmul.f32 %v634_v0, %v792_v57 }
  0x39   : > { %393 = vst [vmem:[%s672_s23 + $0x70] sm:$0xff] %v329_v4  ;;  %v965_v22 = vadd.f32 %v644_v6, %v312_v1  ;;  %v287_v4 = vmul.f32 %v634_v0, %v759_v46  ;;  %v352_v24 = vadd.f32 %v644_v6, %v286_v8  ;;  %v290_v46 = vmul.f32 %v634_v0, %v768_v49  ;;  %v1111_v1 = vld [vmem:[#allocation8_spill] sm:$0xff] }
  0x3a   : > { %394 = vst [vmem:[%s672_s23 + $0x78] sm:$0xff] %v330_v7  ;;  %v351_v7 = vadd.f32 %v644_v6, %v285_v2  ;;  %v293_v49 = vmul.f32 %v634_v0, %v777_v52  ;;  %v358_v27 = vadd.f32 %v644_v6, %v292_v48  ;;  %v296_v52 = vmul.f32 %v634_v0, %v786_v55 }
  0x3b   : > { %395 = vst [vmem:[%s672_s23 + $0x80] sm:$0xff] %v331_v9  ;;  %v353_v9 = vadd.f32 %v644_v6, %v287_v4  ;;  %v356_v26 = vadd.f32 %v644_v6, %v290_v46  ;;  %v299_v55 = vmul.f32 %v634_v0, %v795_v58  ;;  %v301_v57 = vmul.f32 %v634_v0, %v801_v60 }
  0x3c   : > { %396 = vst [vmem:[%s672_s23 + $0x88] sm:$0xff] %v332_v10  ;;  %v355_v10 = vadd.f32 %v644_v6, %v289_v45  ;;  %v362_v29 = vadd.f32 %v644_v6, %v296_v52  ;;  %v364_v30 = vadd.f32 %v644_v6, %v298_v54 }
  0x3d   : > { %397 = vst [vmem:[%s672_s23 + $0x90] sm:$0xff] %v333_v11  ;;  %v357_v11 = vadd.f32 %v644_v6, %v291_v47  ;;  %v365_v31 = vadd.f32 %v644_v6, %v299_v55  ;;  %v367_v33 = vadd.f32 %v644_v6, %v301_v57 }
  0x3e   : > { %398 = vst [vmem:[%s672_s23 + $0x98] sm:$0xff] %v334_v12  ;;  %v359_v12 = vadd.f32 %v644_v6, %v293_v49 }
  0x3f   : > { %399 = vst [vmem:[%s672_s23 + $0xa0] sm:$0xff] %v335_v13  ;;  %v361_v13 = vadd.f32 %v644_v6, %v295_v51 }
  0x40   : > { %400 = vst [vmem:[%s672_s23 + $0xa8] sm:$0xff] %v336_v16  ;;  %v363_v16 = vadd.f32 %v644_v6, %v297_v53 }
  0x41   : > { %401 = vst [vmem:[%s672_s23 + $0xb0] sm:$0xff] %v337_v14  ;;  %v1105_v14 = vld [vmem:[#allocation2_spill] sm:$0xff] }
  0x42   : > { %402 = vst [vmem:[%s672_s23 + $0xb8] sm:$0xff] %v338_v17  ;;  %v302_v58 = vmul.f32 %v634_v0, %v1105_v14  ;;  %v1106_v17 = vld [vmem:[#allocation3_spill] sm:$0xff] }
  0x43   : > { %403 = vst [vmem:[%s672_s23 + $0xc0] sm:$0xff] %v339_v15  ;;  %v303_v59 = vmul.f32 %v634_v0, %v1106_v17  ;;  %v1107_v15 = vld [vmem:[#allocation4_spill] sm:$0xff] }
  0x44   : > { %404 = vst [vmem:[%s672_s23 + $0xc8] sm:$0xff] %v340_v62  ;;  %v304_v60 = vmul.f32 %v634_v0, %v1107_v15  ;;  %v1108_v62 = vld [vmem:[#allocation5_spill] sm:$0xff] }
  0x45   : > { %405 = vst [vmem:[%s672_s23 + $0xd0] sm:$0xff] %v341_v18  ;;  %v305_v34 = vmul.f32 %v634_v0, %v1108_v62  ;;  %v368_v18 = vadd.f32 %v644_v6, %v302_v58  ;;  %v369_v36 = vadd.f32 %v644_v6, %v303_v59 }
  0x46   : > { %406 = vst [vmem:[%s672_s23 + $0xd8] sm:$0xff] %v342_v63  ;;  %v306_v63 = vmul.f32 %v634_v0, %v1109_v35  ;;  %v370_v37 = vadd.f32 %v644_v6, %v304_v60 }
  0x47   : > { %407 = vst [vmem:[%s672_s23 + $0xe0] sm:$0xff] %v343_v19  ;;  %v307_v19 = vmul.f32 %v634_v0, %v821_v5 }
  0x48   : > { %408 = vst [vmem:[%s672_s23 + $0xe8] sm:$0xff] %v344_v3  ;;  %v1110_v3 = vld [vmem:[#allocation7_spill] sm:$0xff]  ;;  %v372_v5 = vadd.f32 %v644_v6, %v306_v63 }
  0x49   : > { %409 = vst [vmem:[%s672_s23 + $0xf0] sm:$0xff] %v345_v20  ;;  %v308_v38 = vmul.f32 %v634_v0, %v1110_v3  ;;  %v371_v20 = vadd.f32 %v644_v6, %v305_v34  ;;  %v373_v21 = vadd.f32 %v644_v6, %v307_v19 }
  0x4a   : > { %410 = vst [vmem:[%s672_s23 + $0xf8] sm:$0xff] %v346_v40  ;;  %v310_v40 = vmul.f32 %v634_v0, %v1111_v1 }
  0x4b   : > { %411 = vst [vmem:[%s672_s23 + $0x100] sm:$0xff] %v347_v41  ;;  %v1112_v41 = vld [vmem:[#allocation9_spill] sm:$0xff] }
  0x4c   : > { %412 = vst [vmem:[%s672_s23 + $0x108] sm:$0xff] %v348_v42  ;;  %v311_v2 = vmul.f32 %v634_v0, %v1112_v41  ;;  %v374_v42 = vadd.f32 %v644_v6, %v308_v38  ;;  %v376_v8 = vadd.f32 %v644_v6, %v310_v40 }
  0x4d   : > { %413 = vst [vmem:[%s672_s23 + $0x110] sm:$0xff] %v349_v43 }
  0x4e   : > { %414 = vst [vmem:[%s672_s23 + $0x118] sm:$0xff] %v350_v44  ;;  %v377_v43 = vadd.f32 %v644_v6, %v311_v2 }
  0x4f   : > { %415 = vst [vmem:[%s672_s23 + $0x120] sm:$0xff] %v351_v7 }
  0x50   : > { %416 = vst [vmem:[%s672_s23 + $0x128] sm:$0xff] %v352_v24 }
  0x51   : > { %417 = vst [vmem:[%s672_s23 + $0x130] sm:$0xff] %v353_v9 }
  0x52   : > { %418 = vst [vmem:[%s672_s23 + $0x138] sm:$0xff] %v354_v25 }
  0x53   : > { %419 = vst [vmem:[%s672_s23 + $0x140] sm:$0xff] %v355_v10 }
  0x54   : > { %420 = vst [vmem:[%s672_s23 + $0x148] sm:$0xff] %v356_v26 }
  0x55   : > { %421 = vst [vmem:[%s672_s23 + $0x150] sm:$0xff] %v357_v11 }
  0x56   : > { %422 = vst [vmem:[%s672_s23 + $0x158] sm:$0xff] %v358_v27 }
  0x57   : > { %423 = vst [vmem:[%s672_s23 + $0x160] sm:$0xff] %v359_v12 }
  0x58   : > { %424 = vst [vmem:[%s672_s23 + $0x168] sm:$0xff] %v360_v28 }
  0x59   : > { %425 = vst [vmem:[%s672_s23 + $0x170] sm:$0xff] %v361_v13 }
  0x5a   : > { %426 = vst [vmem:[%s672_s23 + $0x178] sm:$0xff] %v362_v29 }
  0x5b   : > { %427 = vst [vmem:[%s672_s23 + $0x180] sm:$0xff] %v363_v16 }
  0x5c   : > { %428 = vst [vmem:[%s672_s23 + $0x188] sm:$0xff] %v364_v30 }
  0x5d   : > { %429 = vst [vmem:[%s672_s23 + $0x190] sm:$0xff] %v365_v31 }
  0x5e   : > { %430 = vst [vmem:[%s672_s23 + $0x198] sm:$0xff] %v366_v32 }
  0x5f   : > { %431 = vst [vmem:[%s672_s23 + $0x1a0] sm:$0xff] %v367_v33 }
  0x60   : > { %432 = vst [vmem:[%s672_s23 + $0x1a8] sm:$0xff] %v368_v18 }
  0x61   : > { %433 = vst [vmem:[%s672_s23 + $0x1b0] sm:$0xff] %v369_v36 }
  0x62   : > { %434 = vst [vmem:[%s672_s23 + $0x1b8] sm:$0xff] %v370_v37 }
  0x63   : > { %435 = vst [vmem:[%s672_s23 + $0x1c0] sm:$0xff] %v371_v20 }
  0x64   : > { %436 = vst [vmem:[%s672_s23 + $0x1c8] sm:$0xff] %v372_v5 }
  0x65   : > { %437 = vst [vmem:[%s672_s23 + $0x1d0] sm:$0xff] %v373_v21 }
  0x66   : > { %438 = vst [vmem:[%s672_s23 + $0x1d8] sm:$0xff] %v374_v42 }
  0x67   : > { %439 = vst [vmem:[%s672_s23 + $0x1e0] sm:$0xff] %v375_v61 }
  0x68   : > { %440 = vst [vmem:[%s672_s23 + $0x1e8] sm:$0xff] %v376_v8 }
  0x69   : > { %441 = vst [vmem:[%s672_s23 + $0x1f0] sm:$0xff] %v377_v43 }
  0x6a   : > { %442 = vst [vmem:[%s672_s23 + $0x1f8] sm:$0xff] %v965_v22 }
  0x6b PF: > { %s12_s11 = sadd.s32 1, %s591_s11   ;;  %s1113_s9 = smov %s587_s10 }
  0x6c   : > { %p9_p5 = scmp.ge.s32.totalorder %s12_s11, 6   ;;  %s1114_s10 = smov %s1116_s12 }
  0x6e   :  { %11 = sbr.rel (!%p9_p5) target bundleno = 2 (0x2), region = 58 }

</bundles_post_ra>
